<compile_context>
chip_gen: v7x
topology: tpu7x:2x2x1
jax: 0.10.0
libtpu: 0.0.40
codegen_flags: <defaults>
</compile_context>

<pallas_src>
import functools

import jax
import jax.numpy as jnp
import numpy as np
from jax.experimental import pallas as pl
from jax.experimental.pallas import tpu as pltpu

SUB = 8      # sublanes per compute chunk (one f32 vreg per component slice)
BS_MAX = 64  # max sublanes per grid block (64 * 128 = 8192 residues / step)
NC = 2       # leading "parallel" grid axis (uses both TCs on v7x)


def _loss_kernel(mask_ref, pm_ref, tm_ref, pc_ref, tc_ref,
                 sse_ref, kl_ref, *, n_chunks):
    i = pl.program_id(1)

    @pl.when(i == 0)
    def _init():
        sse_ref[...] = jnp.zeros_like(sse_ref)
        kl_ref[...] = jnp.zeros_like(kl_ref)

    @pl.loop(0, n_chunks)
    def _chunk(c):
        off = pl.multiple_of(c * SUB, SUB)
        sl = pl.ds(off, SUB)

        m = mask_ref[0, sl, :]                 # (SUB, 128) float {0,1}
        valid = m > 0.5

        # ---- masked squared error on the means (also reused for Mahalanobis)
        d0 = pm_ref[0, sl, :] - tm_ref[0, sl, :]
        d1 = pm_ref[1, sl, :] - tm_ref[1, sl, :]
        d2 = pm_ref[2, sl, :] - tm_ref[2, sl, :]
        sse_ref[0] += (d0 * d0 + d1 * d1 + d2 * d2) * m

        # ---- per-residue KL divergence between 3x3 MVNs (closed form) ----
        t00 = tc_ref[0, sl, :]; t01 = tc_ref[1, sl, :]; t02 = tc_ref[2, sl, :]
        t10 = tc_ref[3, sl, :]; t11 = tc_ref[4, sl, :]; t12 = tc_ref[5, sl, :]
        t20 = tc_ref[6, sl, :]; t21 = tc_ref[7, sl, :]; t22 = tc_ref[8, sl, :]
        p00 = pc_ref[0, sl, :]; p01 = pc_ref[1, sl, :]; p02 = pc_ref[2, sl, :]
        p10 = pc_ref[3, sl, :]; p11 = pc_ref[4, sl, :]; p12 = pc_ref[5, sl, :]
        p20 = pc_ref[6, sl, :]; p21 = pc_ref[7, sl, :]; p22 = pc_ref[8, sl, :]

        c00 = t11 * t22 - t12 * t21
        c01 = t10 * t22 - t12 * t20
        c02 = t10 * t21 - t11 * t20
        det_t = t00 * c00 - t01 * c01 + t02 * c02
        det_p = (p00 * (p11 * p22 - p12 * p21)
                 - p01 * (p10 * p22 - p12 * p20)
                 + p02 * (p10 * p21 - p11 * p20))

        # guard padded residues (covars are all-zero there)
        safe_det_t = jnp.where(valid, det_t, 1.0)
        safe_det_p = jnp.where(valid, det_p, 1.0)
        inv_det_t = 1.0 / safe_det_t

        # rows of St^-1 (adjugate / det), consumed immediately to keep the
        # number of live vregs low.
        a00 = c00 * inv_det_t
        a01 = (t02 * t21 - t01 * t22) * inv_det_t
        a02 = (t01 * t12 - t02 * t11) * inv_det_t
        tr = a00 * p00 + a01 * p10 + a02 * p20
        quad = d0 * (a00 * d0 + a01 * d1 + a02 * d2)

        a10 = (t12 * t20 - t10 * t22) * inv_det_t
        a11 = (t00 * t22 - t02 * t20) * inv_det_t
        a12 = (t02 * t10 - t00 * t12) * inv_det_t
        tr = tr + a10 * p01 + a11 * p11 + a12 * p21
        quad = quad + d1 * (a10 * d0 + a11 * d1 + a12 * d2)

        a20 = c02 * inv_det_t
        a21 = (t01 * t20 - t00 * t21) * inv_det_t
        a22 = (t00 * t11 - t01 * t10) * inv_det_t
        tr = tr + a20 * p02 + a21 * p12 + a22 * p22
        quad = quad + d2 * (a20 * d0 + a21 * d1 + a22 * d2)

        # single log of the determinant ratio (halves EUP pushes)
        kl = 0.5 * (tr + quad - 3.0 + jnp.log(safe_det_t / safe_det_p))
        kl_ref[0] += jnp.where(valid, kl, 0.0)


def dynaprot_loss(preds, batch, loss_weights):
    """Pallas implementation of DynaProtLoss.forward.

    Returns (total_loss, loss_dict) matching the PyTorch module (device
    scalars in loss_dict so the function is jit-safe).
    """
    w = loss_weights['resi_gaussians']
    w_mse = w.get('mse_means', None)
    w_kl = w.get('kldiv', None)

    mask = batch['resi_pad_mask'].astype(jnp.float32)          # (B, L)
    tmeans = batch['dynamics_means'].astype(jnp.float32)       # (B, L, 3)
    tcovars = batch['dynamics_covars'].astype(jnp.float32)     # (B, L, 3, 3)
    pmeans = preds['means'].astype(jnp.float32)                # (B, L, 3)
    pcovars = preds['covars'].astype(jnp.float32)              # (B, L, 3, 3)

    B, L = mask.shape
    N = B * L

    # residue r -> (sublane r // 128, lane r % 128)
    S = pl.cdiv(N, 128)                                   # sublanes needed
    S8 = ((S + SUB - 1) // SUB) * SUB                     # pad to vreg rows
    BS = min(BS_MAX, S8)                                  # sublanes per block
    S_p = ((S8 + NC * BS - 1) // (NC * BS)) * (NC * BS)   # pad to grid tiling
    G = S_p // (NC * BS)                                  # blocks per core
    n_chunks = BS // SUB

    def pack(x, c):
        # (B, L, ...) -> (c, S_p, 128): components major, residues on
        # sublane x lane.  Padded residues are zero (masked out in-kernel).
        x = x.reshape(N, c)
        x = jnp.pad(x, ((0, S_p * 128 - N), (0, 0)))
        return x.reshape(S_p, 128, c).transpose(2, 0, 1)

    mask_p = pack(mask, 1)
    pm = pack(pmeans, 3)
    tm = pack(tmeans, 3)
    pc = pack(pcovars, 9)   # row-major flattened 3x3
    tc = pack(tcovars, 9)

    def in_spec(c):
        return pl.BlockSpec((c, BS, 128), lambda co, i: (0, co * G + i, 0))

    out_spec = pl.BlockSpec((1, SUB, 128), lambda co, i: (co, 0, 0))

    cost = pl.CostEstimate(
        flops=int(120 * S_p * 128),
        transcendentals=int(S_p * 128),
        bytes_accessed=int(25 * 4 * S_p * 128),
    )

    sse_part, kl_part = pl.pallas_call(
        functools.partial(_loss_kernel, n_chunks=n_chunks),
        out_shape=(jax.ShapeDtypeStruct((NC, SUB, 128), jnp.float32),
                   jax.ShapeDtypeStruct((NC, SUB, 128), jnp.float32)),
        grid=(NC, G),
        in_specs=[in_spec(1), in_spec(3), in_spec(3), in_spec(9), in_spec(9)],
        out_specs=(out_spec, out_spec),
        compiler_params=pltpu.CompilerParams(
            dimension_semantics=("parallel", "arbitrary")),
        cost_estimate=cost,
    )(mask_p, pm, tm, pc, tc)

    # Final scalar math (counts, means, weighting) in plain JAX.
    cnt = jnp.sum(mask)
    mse = jnp.sum(sse_part) / (3.0 * cnt)
    kld = jnp.sum(kl_part) / cnt

    total = jnp.float32(0.0)
    if w_mse is not None:
        total = total + w_mse * mse
    if w_kl is not None:
        total = total + w_kl * kld

    loss_dict = dict(
        resi_gaussians=dict(
            mse_means=mse if w_mse is not None else None,
            kldiv=kld if w_kl is not None else None,
        ),
        resi_rmsf=dict(),
    )
    return total, loss_dict


def _reference(preds, batch, loss_weights):
    """Pure-JAX reference (mirrors PyTorch semantics) for a sanity check."""
    mask = batch['resi_pad_mask'].astype(bool)
    tm = batch['dynamics_means'].astype(jnp.float32)[mask]
    tc = batch['dynamics_covars'].astype(jnp.float32)[mask]
    pm = preds['means'].astype(jnp.float32)[mask]
    pc = preds['covars'].astype(jnp.float32)[mask]
    mse = jnp.mean((pm - tm) ** 2)
    inv_t = jnp.linalg.inv(tc)
    tr = jnp.trace(inv_t @ pc, axis1=-2, axis2=-1)
    d = (tm - pm)[..., None]
    quad = (jnp.swapaxes(d, -1, -2) @ inv_t @ d)[..., 0, 0]
    kl = 0.5 * (tr + quad - 3.0
                + jnp.log(jnp.linalg.det(tc)) - jnp.log(jnp.linalg.det(pc)))
    kld = jnp.mean(kl)
    w = loss_weights['resi_gaussians']
    total = w['mse_means'] * mse + w['kldiv'] * kld
    return total, mse, kld


def _make_inputs(key, B, L):
    k1, k2, k3, k4 = jax.random.split(key, 4)

    def spd(k):
        a = jax.random.normal(k, (B, L, 3, 3), dtype=jnp.float32)
        return a @ jnp.swapaxes(a, -1, -2) + 0.5 * jnp.eye(3, dtype=jnp.float32)

    # padding mask: last few residues of the last batch element are padded
    mask = jnp.ones((B, L), dtype=jnp.float32)
    npad = max(1, L // 8)
    mask = mask.at[B - 1, -npad:].set(0.0)

    batch = dict(
        resi_pad_mask=mask,
        dynamics_means=jax.random.normal(k1, (B, L, 3), dtype=jnp.float32),
        dynamics_covars=spd(k2),
    )
    preds = dict(
        means=jax.random.normal(k3, (B, L, 3), dtype=jnp.float32),
        covars=spd(k4),
    )
    return preds, batch


if __name__ == "__main__":
    cfg_loss_weights = dict(
        resi_gaussians=dict(mse_means=1.0, kldiv=0.5),
        resi_rmsf=dict(),
    )

    key = jax.random.PRNGKey(0)
    k_small, k_big = jax.random.split(key)

    # small case (module-consistent tiny shapes)
    preds_s, batch_s = _make_inputs(k_small, B=2, L=8)
    total_s, ld_s = dynaprot_loss(preds_s, batch_s, cfg_loss_weights)
    total_s = jax.block_until_ready(total_s)
    ref_t, ref_m, ref_k = _reference(preds_s, batch_s, cfg_loss_weights)
    np.testing.assert_allclose(float(total_s), float(ref_t), rtol=2e-4, atol=2e-4)
    np.testing.assert_allclose(float(ld_s['resi_gaussians']['mse_means']),
                               float(ref_m), rtol=2e-4, atol=2e-4)
    np.testing.assert_allclose(float(ld_s['resi_gaussians']['kldiv']),
                               float(ref_k), rtol=2e-4, atol=2e-4)

    # larger case: exercises multi-block (G > 1) and multi-chunk (BS = 64) path
    preds_b, batch_b = _make_inputs(k_big, B=2, L=9000)
    total_b, ld_b = dynaprot_loss(preds_b, batch_b, cfg_loss_weights)
    total_b = jax.block_until_ready(total_b)
    ref_t, ref_m, ref_k = _reference(preds_b, batch_b, cfg_loss_weights)
    np.testing.assert_allclose(float(total_b), float(ref_t), rtol=2e-4, atol=2e-4)
    np.testing.assert_allclose(float(ld_b['resi_gaussians']['mse_means']),
                               float(ref_m), rtol=2e-4, atol=2e-4)
    np.testing.assert_allclose(float(ld_b['resi_gaussians']['kldiv']),
                               float(ref_k), rtol=2e-4, atol=2e-4)

    print("KERNEL_OK")
</pallas_src>

<mosaic_0001>
module attributes {stable_mosaic.version = 11 : i64} {
  func.func @_loss_kernel(%arg0: i32, %arg1: i32, %arg2: memref<1x8x128xf32, #tpu.memory_space<vmem>>, %arg3: memref<3x8x128xf32, #tpu.memory_space<vmem>>, %arg4: memref<3x8x128xf32, #tpu.memory_space<vmem>>, %arg5: memref<9x8x128xf32, #tpu.memory_space<vmem>>, %arg6: memref<9x8x128xf32, #tpu.memory_space<vmem>>, %arg7: memref<1x8x128xf32, #tpu.memory_space<vmem>>, %arg8: memref<1x8x128xf32, #tpu.memory_space<vmem>>) attributes {dimension_semantics = [#tpu.dimension_semantics<parallel>, #tpu.dimension_semantics<arbitrary>], iteration_bounds = array<i64: 2, 1>, scalar_prefetch = 0 : i64, scratch_operands = 0 : i64, tpu.core_type = #tpu.core_type<tc>, window_params = [{transform_indices = @transform_0, window_bounds = array<i64: 1, 8, 128>}, {transform_indices = @transform_1, window_bounds = array<i64: 3, 8, 128>}, {transform_indices = @transform_2, window_bounds = array<i64: 3, 8, 128>}, {transform_indices = @transform_3, window_bounds = array<i64: 9, 8, 128>}, {transform_indices = @transform_4, window_bounds = array<i64: 9, 8, 128>}, {transform_indices = @transform_5, window_bounds = array<i64: 1, 8, 128>}, {transform_indices = @transform_6, window_bounds = array<i64: 1, 8, 128>}]} {
    %c0_i32 = arith.constant 0 : i32
    %0 = arith.cmpi eq, %arg1, %c0_i32 : i32
    %1 = arith.extui %0 : i1 to i32
    %c0_i32_0 = arith.constant 0 : i32
    %2 = arith.cmpi ne, %1, %c0_i32_0 : i32
    scf.if %2 {
      %cst_63 = arith.constant 0.000000e+00 : f32
      %216 = vector.broadcast %cst_63 : f32 to vector<1x8x128xf32>
      %c0_64 = arith.constant 0 : index
      %c0_65 = arith.constant 0 : index
      %c0_66 = arith.constant 0 : index
      %217 = vector.load %arg7[%c0_64, %c0_65, %c0_66] : memref<1x8x128xf32, #tpu.memory_space<vmem>>, vector<1x8x128xf32>
      tpu.vector_store %arg7[%c0_64, %c0_65, %c0_66], %216 {strides = array<i32>} : memref<1x8x128xf32, #tpu.memory_space<vmem>>, vector<1x8x128xf32>,
      %cst_67 = arith.constant 0.000000e+00 : f32
      %218 = vector.broadcast %cst_67 : f32 to vector<1x8x128xf32>
      %c0_68 = arith.constant 0 : index
      %c0_69 = arith.constant 0 : index
      %c0_70 = arith.constant 0 : index
      %219 = vector.load %arg8[%c0_68, %c0_69, %c0_70] : memref<1x8x128xf32, #tpu.memory_space<vmem>>, vector<1x8x128xf32>
      tpu.vector_store %arg8[%c0_68, %c0_69, %c0_70], %218 {strides = array<i32>} : memref<1x8x128xf32, #tpu.memory_space<vmem>>, vector<1x8x128xf32>,
    } else {
    }
    %c0_i32_1 = arith.constant 0 : i32
    %c1_i32 = arith.constant 1 : i32
    %3 = arith.muli %c0_i32_1, %c1_i32 : i32
    %c0_i32_2 = arith.constant 0 : i32
    %4 = arith.addi %c0_i32_2, %3 : i32
    %c8_i32 = arith.constant 8 : i32
    %5 = arith.muli %4, %c8_i32 : i32
    %6 = tpu.assume_multiple %5, 8 : i32
    %c0 = arith.constant 0 : index
    %7 = arith.index_cast %6 : i32 to index
    %c0_3 = arith.constant 0 : index
    %8 = vector.load %arg2[%c0, %7, %c0_3] : memref<1x8x128xf32, #tpu.memory_space<vmem>>, vector<1x8x128xf32>
    %9 = vector.shape_cast %8 : vector<1x8x128xf32> to vector<8x128xf32>
    %cst = arith.constant 5.000000e-01 : f32
    %10 = vector.broadcast %cst : f32 to vector<8x128xf32>
    %11 = arith.cmpf ogt, %9, %10 : vector<8x128xf32>
    %c0_4 = arith.constant 0 : index
    %12 = arith.index_cast %6 : i32 to index
    %c0_5 = arith.constant 0 : index
    %13 = vector.load %arg3[%c0_4, %12, %c0_5] : memref<3x8x128xf32, #tpu.memory_space<vmem>>, vector<1x8x128xf32>
    %14 = vector.shape_cast %13 : vector<1x8x128xf32> to vector<8x128xf32>
    %c0_6 = arith.constant 0 : index
    %15 = arith.index_cast %6 : i32 to index
    %c0_7 = arith.constant 0 : index
    %16 = vector.load %arg4[%c0_6, %15, %c0_7] : memref<3x8x128xf32, #tpu.memory_space<vmem>>, vector<1x8x128xf32>
    %17 = vector.shape_cast %16 : vector<1x8x128xf32> to vector<8x128xf32>
    %18 = arith.subf %14, %17 : vector<8x128xf32>
    %c1 = arith.constant 1 : index
    %19 = arith.index_cast %6 : i32 to index
    %c0_8 = arith.constant 0 : index
    %20 = vector.load %arg3[%c1, %19, %c0_8] : memref<3x8x128xf32, #tpu.memory_space<vmem>>, vector<1x8x128xf32>
    %21 = vector.shape_cast %20 : vector<1x8x128xf32> to vector<8x128xf32>
    %c1_9 = arith.constant 1 : index
    %22 = arith.index_cast %6 : i32 to index
    %c0_10 = arith.constant 0 : index
    %23 = vector.load %arg4[%c1_9, %22, %c0_10] : memref<3x8x128xf32, #tpu.memory_space<vmem>>, vector<1x8x128xf32>
    %24 = vector.shape_cast %23 : vector<1x8x128xf32> to vector<8x128xf32>
    %25 = arith.subf %21, %24 : vector<8x128xf32>
    %c2 = arith.constant 2 : index
    %26 = arith.index_cast %6 : i32 to index
    %c0_11 = arith.constant 0 : index
    %27 = vector.load %arg3[%c2, %26, %c0_11] : memref<3x8x128xf32, #tpu.memory_space<vmem>>, vector<1x8x128xf32>
    %28 = vector.shape_cast %27 : vector<1x8x128xf32> to vector<8x128xf32>
    %c2_12 = arith.constant 2 : index
    %29 = arith.index_cast %6 : i32 to index
    %c0_13 = arith.constant 0 : index
    %30 = vector.load %arg4[%c2_12, %29, %c0_13] : memref<3x8x128xf32, #tpu.memory_space<vmem>>, vector<1x8x128xf32>
    %31 = vector.shape_cast %30 : vector<1x8x128xf32> to vector<8x128xf32>
    %32 = arith.subf %28, %31 : vector<8x128xf32>
    %c0_14 = arith.constant 0 : index
    %c0_15 = arith.constant 0 : index
    %c0_16 = arith.constant 0 : index
    %33 = vector.load %arg7[%c0_14, %c0_15, %c0_16] : memref<1x8x128xf32, #tpu.memory_space<vmem>>, vector<1x8x128xf32>
    %34 = vector.shape_cast %33 : vector<1x8x128xf32> to vector<8x128xf32>
    %35 = arith.mulf %18, %18 : vector<8x128xf32>
    %36 = arith.mulf %25, %25 : vector<8x128xf32>
    %37 = arith.addf %35, %36 : vector<8x128xf32>
    %38 = arith.mulf %32, %32 : vector<8x128xf32>
    %39 = arith.addf %37, %38 : vector<8x128xf32>
    %40 = arith.mulf %39, %9 : vector<8x128xf32>
    %41 = arith.addf %34, %40 : vector<8x128xf32>
    %c0_17 = arith.constant 0 : index
    %c0_18 = arith.constant 0 : index
    %c0_19 = arith.constant 0 : index
    %42 = vector.load %arg7[%c0_17, %c0_18, %c0_19] : memref<1x8x128xf32, #tpu.memory_space<vmem>>, vector<1x8x128xf32>
    %43 = vector.shape_cast %42 : vector<1x8x128xf32> to vector<8x128xf32>
    %44 = vector.shape_cast %41 : vector<8x128xf32> to vector<1x8x128xf32>
    tpu.vector_store %arg7[%c0_17, %c0_18, %c0_19], %44 {strides = array<i32>} : memref<1x8x128xf32, #tpu.memory_space<vmem>>, vector<1x8x128xf32>,
    %c0_20 = arith.constant 0 : index
    %45 = arith.index_cast %6 : i32 to index
    %c0_21 = arith.constant 0 : index
    %46 = vector.load %arg6[%c0_20, %45, %c0_21] : memref<9x8x128xf32, #tpu.memory_space<vmem>>, vector<1x8x128xf32>
    %47 = vector.shape_cast %46 : vector<1x8x128xf32> to vector<8x128xf32>
    %c1_22 = arith.constant 1 : index
    %48 = arith.index_cast %6 : i32 to index
    %c0_23 = arith.constant 0 : index
    %49 = vector.load %arg6[%c1_22, %48, %c0_23] : memref<9x8x128xf32, #tpu.memory_space<vmem>>, vector<1x8x128xf32>
    %50 = vector.shape_cast %49 : vector<1x8x128xf32> to vector<8x128xf32>
    %c2_24 = arith.constant 2 : index
    %51 = arith.index_cast %6 : i32 to index
    %c0_25 = arith.constant 0 : index
    %52 = vector.load %arg6[%c2_24, %51, %c0_25] : memref<9x8x128xf32, #tpu.memory_space<vmem>>, vector<1x8x128xf32>
    %53 = vector.shape_cast %52 : vector<1x8x128xf32> to vector<8x128xf32>
    %c3 = arith.constant 3 : index
    %54 = arith.index_cast %6 : i32 to index
    %c0_26 = arith.constant 0 : index
    %55 = vector.load %arg6[%c3, %54, %c0_26] : memref<9x8x128xf32, #tpu.memory_space<vmem>>, vector<1x8x128xf32>
    %56 = vector.shape_cast %55 : vector<1x8x128xf32> to vector<8x128xf32>
    %c4 = arith.constant 4 : index
    %57 = arith.index_cast %6 : i32 to index
    %c0_27 = arith.constant 0 : index
    %58 = vector.load %arg6[%c4, %57, %c0_27] : memref<9x8x128xf32, #tpu.memory_space<vmem>>, vector<1x8x128xf32>
    %59 = vector.shape_cast %58 : vector<1x8x128xf32> to vector<8x128xf32>
    %c5 = arith.constant 5 : index
    %60 = arith.index_cast %6 : i32 to index
    %c0_28 = arith.constant 0 : index
    %61 = vector.load %arg6[%c5, %60, %c0_28] : memref<9x8x128xf32, #tpu.memory_space<vmem>>, vector<1x8x128xf32>
    %62 = vector.shape_cast %61 : vector<1x8x128xf32> to vector<8x128xf32>
    %c6 = arith.constant 6 : index
    %63 = arith.index_cast %6 : i32 to index
    %c0_29 = arith.constant 0 : index
    %64 = vector.load %arg6[%c6, %63, %c0_29] : memref<9x8x128xf32, #tpu.memory_space<vmem>>, vector<1x8x128xf32>
    %65 = vector.shape_cast %64 : vector<1x8x128xf32> to vector<8x128xf32>
    %c7 = arith.constant 7 : index
    %66 = arith.index_cast %6 : i32 to index
    %c0_30 = arith.constant 0 : index
    %67 = vector.load %arg6[%c7, %66, %c0_30] : memref<9x8x128xf32, #tpu.memory_space<vmem>>, vector<1x8x128xf32>
    %68 = vector.shape_cast %67 : vector<1x8x128xf32> to vector<8x128xf32>
    %c8 = arith.constant 8 : index
    %69 = arith.index_cast %6 : i32 to index
    %c0_31 = arith.constant 0 : index
    %70 = vector.load %arg6[%c8, %69, %c0_31] : memref<9x8x128xf32, #tpu.memory_space<vmem>>, vector<1x8x128xf32>
    %71 = vector.shape_cast %70 : vector<1x8x128xf32> to vector<8x128xf32>
    %c0_32 = arith.constant 0 : index
    %72 = arith.index_cast %6 : i32 to index
    %c0_33 = arith.constant 0 : index
    %73 = vector.load %arg5[%c0_32, %72, %c0_33] : memref<9x8x128xf32, #tpu.memory_space<vmem>>, vector<1x8x128xf32>
    %74 = vector.shape_cast %73 : vector<1x8x128xf32> to vector<8x128xf32>
    %c1_34 = arith.constant 1 : index
    %75 = arith.index_cast %6 : i32 to index
    %c0_35 = arith.constant 0 : index
    %76 = vector.load %arg5[%c1_34, %75, %c0_35] : memref<9x8x128xf32, #tpu.memory_space<vmem>>, vector<1x8x128xf32>
    %77 = vector.shape_cast %76 : vector<1x8x128xf32> to vector<8x128xf32>
    %c2_36 = arith.constant 2 : index
    %78 = arith.index_cast %6 : i32 to index
    %c0_37 = arith.constant 0 : index
    %79 = vector.load %arg5[%c2_36, %78, %c0_37] : memref<9x8x128xf32, #tpu.memory_space<vmem>>, vector<1x8x128xf32>
    %80 = vector.shape_cast %79 : vector<1x8x128xf32> to vector<8x128xf32>
    %c3_38 = arith.constant 3 : index
    %81 = arith.index_cast %6 : i32 to index
    %c0_39 = arith.constant 0 : index
    %82 = vector.load %arg5[%c3_38, %81, %c0_39] : memref<9x8x128xf32, #tpu.memory_space<vmem>>, vector<1x8x128xf32>
    %83 = vector.shape_cast %82 : vector<1x8x128xf32> to vector<8x128xf32>
    %c4_40 = arith.constant 4 : index
    %84 = arith.index_cast %6 : i32 to index
    %c0_41 = arith.constant 0 : index
    %85 = vector.load %arg5[%c4_40, %84, %c0_41] : memref<9x8x128xf32, #tpu.memory_space<vmem>>, vector<1x8x128xf32>
    %86 = vector.shape_cast %85 : vector<1x8x128xf32> to vector<8x128xf32>
    %c5_42 = arith.constant 5 : index
    %87 = arith.index_cast %6 : i32 to index
    %c0_43 = arith.constant 0 : index
    %88 = vector.load %arg5[%c5_42, %87, %c0_43] : memref<9x8x128xf32, #tpu.memory_space<vmem>>, vector<1x8x128xf32>
    %89 = vector.shape_cast %88 : vector<1x8x128xf32> to vector<8x128xf32>
    %c6_44 = arith.constant 6 : index
    %90 = arith.index_cast %6 : i32 to index
    %c0_45 = arith.constant 0 : index
    %91 = vector.load %arg5[%c6_44, %90, %c0_45] : memref<9x8x128xf32, #tpu.memory_space<vmem>>, vector<1x8x128xf32>
    %92 = vector.shape_cast %91 : vector<1x8x128xf32> to vector<8x128xf32>
    %c7_46 = arith.constant 7 : index
    %93 = arith.index_cast %6 : i32 to index
    %c0_47 = arith.constant 0 : index
    %94 = vector.load %arg5[%c7_46, %93, %c0_47] : memref<9x8x128xf32, #tpu.memory_space<vmem>>, vector<1x8x128xf32>
    %95 = vector.shape_cast %94 : vector<1x8x128xf32> to vector<8x128xf32>
    %c8_48 = arith.constant 8 : index
    %96 = arith.index_cast %6 : i32 to index
    %c0_49 = arith.constant 0 : index
    %97 = vector.load %arg5[%c8_48, %96, %c0_49] : memref<9x8x128xf32, #tpu.memory_space<vmem>>, vector<1x8x128xf32>
    %98 = vector.shape_cast %97 : vector<1x8x128xf32> to vector<8x128xf32>
    %99 = arith.mulf %59, %71 : vector<8x128xf32>
    %100 = arith.mulf %62, %68 : vector<8x128xf32>
    %101 = arith.subf %99, %100 : vector<8x128xf32>
    %102 = arith.mulf %56, %71 : vector<8x128xf32>
    %103 = arith.mulf %62, %65 : vector<8x128xf32>
    %104 = arith.subf %102, %103 : vector<8x128xf32>
    %105 = arith.mulf %56, %68 : vector<8x128xf32>
    %106 = arith.mulf %59, %65 : vector<8x128xf32>
    %107 = arith.subf %105, %106 : vector<8x128xf32>
    %108 = arith.mulf %47, %101 : vector<8x128xf32>
    %109 = arith.mulf %50, %104 : vector<8x128xf32>
    %110 = arith.subf %108, %109 : vector<8x128xf32>
    %111 = arith.mulf %53, %107 : vector<8x128xf32>
    %112 = arith.addf %110, %111 : vector<8x128xf32>
    %113 = arith.mulf %86, %98 : vector<8x128xf32>
    %114 = arith.mulf %89, %95 : vector<8x128xf32>
    %115 = arith.subf %113, %114 : vector<8x128xf32>
    %116 = arith.mulf %74, %115 : vector<8x128xf32>
    %117 = arith.mulf %83, %98 : vector<8x128xf32>
    %118 = arith.mulf %89, %92 : vector<8x128xf32>
    %119 = arith.subf %117, %118 : vector<8x128xf32>
    %120 = arith.mulf %77, %119 : vector<8x128xf32>
    %121 = arith.subf %116, %120 : vector<8x128xf32>
    %122 = arith.mulf %83, %95 : vector<8x128xf32>
    %123 = arith.mulf %86, %92 : vector<8x128xf32>
    %124 = arith.subf %122, %123 : vector<8x128xf32>
    %125 = arith.mulf %80, %124 : vector<8x128xf32>
    %126 = arith.addf %121, %125 : vector<8x128xf32>
    %cst_50 = arith.constant 1.000000e+00 : f32
    %127 = vector.broadcast %cst_50 : f32 to vector<8x128xf32>
    %128 = arith.select %11, %112, %127 : vector<8x128xi1>, vector<8x128xf32>
    %cst_51 = arith.constant 1.000000e+00 : f32
    %129 = vector.broadcast %cst_51 : f32 to vector<8x128xf32>
    %130 = arith.select %11, %126, %129 : vector<8x128xi1>, vector<8x128xf32>
    %cst_52 = arith.constant 1.000000e+00 : f32
    %131 = vector.broadcast %cst_52 : f32 to vector<8x128xf32>
    %132 = arith.divf %131, %128 : vector<8x128xf32>
    %133 = arith.mulf %101, %132 : vector<8x128xf32>
    %134 = arith.mulf %53, %68 : vector<8x128xf32>
    %135 = arith.mulf %50, %71 : vector<8x128xf32>
    %136 = arith.subf %134, %135 : vector<8x128xf32>
    %137 = arith.mulf %136, %132 : vector<8x128xf32>
    %138 = arith.mulf %50, %62 : vector<8x128xf32>
    %139 = arith.mulf %53, %59 : vector<8x128xf32>
    %140 = arith.subf %138, %139 : vector<8x128xf32>
    %141 = arith.mulf %140, %132 : vector<8x128xf32>
    %142 = arith.mulf %133, %74 : vector<8x128xf32>
    %143 = arith.mulf %137, %83 : vector<8x128xf32>
    %144 = arith.addf %142, %143 : vector<8x128xf32>
    %145 = arith.mulf %141, %92 : vector<8x128xf32>
    %146 = arith.addf %144, %145 : vector<8x128xf32>
    %147 = arith.mulf %133, %18 : vector<8x128xf32>
    %148 = arith.mulf %137, %25 : vector<8x128xf32>
    %149 = arith.addf %147, %148 : vector<8x128xf32>
    %150 = arith.mulf %141, %32 : vector<8x128xf32>
    %151 = arith.addf %149, %150 : vector<8x128xf32>
    %152 = arith.mulf %18, %151 : vector<8x128xf32>
    %153 = arith.mulf %62, %65 : vector<8x128xf32>
    %154 = arith.mulf %56, %71 : vector<8x128xf32>
    %155 = arith.subf %153, %154 : vector<8x128xf32>
    %156 = arith.mulf %155, %132 : vector<8x128xf32>
    %157 = arith.mulf %47, %71 : vector<8x128xf32>
    %158 = arith.mulf %53, %65 : vector<8x128xf32>
    %159 = arith.subf %157, %158 : vector<8x128xf32>
    %160 = arith.mulf %159, %132 : vector<8x128xf32>
    %161 = arith.mulf %53, %56 : vector<8x128xf32>
    %162 = arith.mulf %47, %62 : vector<8x128xf32>
    %163 = arith.subf %161, %162 : vector<8x128xf32>
    %164 = arith.mulf %163, %132 : vector<8x128xf32>
    %165 = arith.mulf %156, %77 : vector<8x128xf32>
    %166 = arith.addf %146, %165 : vector<8x128xf32>
    %167 = arith.mulf %160, %86 : vector<8x128xf32>
    %168 = arith.addf %166, %167 : vector<8x128xf32>
    %169 = arith.mulf %164, %95 : vector<8x128xf32>
    %170 = arith.addf %168, %169 : vector<8x128xf32>
    %171 = arith.mulf %156, %18 : vector<8x128xf32>
    %172 = arith.mulf %160, %25 : vector<8x128xf32>
    %173 = arith.addf %171, %172 : vector<8x128xf32>
    %174 = arith.mulf %164, %32 : vector<8x128xf32>
    %175 = arith.addf %173, %174 : vector<8x128xf32>
    %176 = arith.mulf %25, %175 : vector<8x128xf32>
    %177 = arith.addf %152, %176 : vector<8x128xf32>
    %178 = arith.mulf %107, %132 : vector<8x128xf32>
    %179 = arith.mulf %50, %65 : vector<8x128xf32>
    %180 = arith.mulf %47, %68 : vector<8x128xf32>
    %181 = arith.subf %179, %180 : vector<8x128xf32>
    %182 = arith.mulf %181, %132 : vector<8x128xf32>
    %183 = arith.mulf %47, %59 : vector<8x128xf32>
    %184 = arith.mulf %50, %56 : vector<8x128xf32>
    %185 = arith.subf %183, %184 : vector<8x128xf32>
    %186 = arith.mulf %185, %132 : vector<8x128xf32>
    %187 = arith.mulf %178, %80 : vector<8x128xf32>
    %188 = arith.addf %170, %187 : vector<8x128xf32>
    %189 = arith.mulf %182, %89 : vector<8x128xf32>
    %190 = arith.addf %188, %189 : vector<8x128xf32>
    %191 = arith.mulf %186, %98 : vector<8x128xf32>
    %192 = arith.addf %190, %191 : vector<8x128xf32>
    %193 = arith.mulf %178, %18 : vector<8x128xf32>
    %194 = arith.mulf %182, %25 : vector<8x128xf32>
    %195 = arith.addf %193, %194 : vector<8x128xf32>
    %196 = arith.mulf %186, %32 : vector<8x128xf32>
    %197 = arith.addf %195, %196 : vector<8x128xf32>
    %198 = arith.mulf %32, %197 : vector<8x128xf32>
    %199 = arith.addf %177, %198 : vector<8x128xf32>
    %200 = arith.addf %192, %199 : vector<8x128xf32>
    %cst_53 = arith.constant 3.000000e+00 : f32
    %201 = vector.broadcast %cst_53 : f32 to vector<8x128xf32>
    %202 = arith.subf %200, %201 : vector<8x128xf32>
    %203 = arith.divf %128, %130 : vector<8x128xf32>
    %204 = math.log %203 : vector<8x128xf32>
    %205 = arith.addf %202, %204 : vector<8x128xf32>
    %cst_54 = arith.constant 5.000000e-01 : f32
    %206 = vector.broadcast %cst_54 : f32 to vector<8x128xf32>
    %207 = arith.mulf %206, %205 : vector<8x128xf32>
    %c0_55 = arith.constant 0 : index
    %c0_56 = arith.constant 0 : index
    %c0_57 = arith.constant 0 : index
    %208 = vector.load %arg8[%c0_55, %c0_56, %c0_57] : memref<1x8x128xf32, #tpu.memory_space<vmem>>, vector<1x8x128xf32>
    %209 = vector.shape_cast %208 : vector<1x8x128xf32> to vector<8x128xf32>
    %cst_58 = arith.constant 0.000000e+00 : f32
    %210 = vector.broadcast %cst_58 : f32 to vector<8x128xf32>
    %211 = arith.select %11, %207, %210 : vector<8x128xi1>, vector<8x128xf32>
    %212 = arith.addf %209, %211 : vector<8x128xf32>
    %c0_59 = arith.constant 0 : index
    %c0_60 = arith.constant 0 : index
    %c0_61 = arith.constant 0 : index
    %213 = vector.load %arg8[%c0_59, %c0_60, %c0_61] : memref<1x8x128xf32, #tpu.memory_space<vmem>>, vector<1x8x128xf32>
    %214 = vector.shape_cast %213 : vector<1x8x128xf32> to vector<8x128xf32>
    %215 = vector.shape_cast %212 : vector<8x128xf32> to vector<1x8x128xf32>
    tpu.vector_store %arg8[%c0_59, %c0_60, %c0_61], %215 {strides = array<i32>} : memref<1x8x128xf32, #tpu.memory_space<vmem>>, vector<1x8x128xf32>,
    %c1_i32_62 = arith.constant 1 : i32
    return
  }
  func.func @transform_0(%arg0: i32, %arg1: i32) -> (i32, i32, i32) {
    %c1_i32 = arith.constant 1 : i32
    %0 = arith.muli %arg0, %c1_i32 : i32
    %1 = arith.addi %0, %arg1 : i32
    %c0_i32 = arith.constant 0 : i32
    %c0_i32_0 = arith.constant 0 : i32
    %c0_i32_1 = arith.constant 0 : i32
    return %c0_i32, %1, %c0_i32_0 : i32, i32, i32
  }
  func.func @transform_1(%arg0: i32, %arg1: i32) -> (i32, i32, i32) {
    %c1_i32 = arith.constant 1 : i32
    %0 = arith.muli %arg0, %c1_i32 : i32
    %1 = arith.addi %0, %arg1 : i32
    %c0_i32 = arith.constant 0 : i32
    %c0_i32_0 = arith.constant 0 : i32
    %c0_i32_1 = arith.constant 0 : i32
    return %c0_i32, %1, %c0_i32_0 : i32, i32, i32
  }
  func.func @transform_2(%arg0: i32, %arg1: i32) -> (i32, i32, i32) {
    %c1_i32 = arith.constant 1 : i32
    %0 = arith.muli %arg0, %c1_i32 : i32
    %1 = arith.addi %0, %arg1 : i32
    %c0_i32 = arith.constant 0 : i32
    %c0_i32_0 = arith.constant 0 : i32
    %c0_i32_1 = arith.constant 0 : i32
    return %c0_i32, %1, %c0_i32_0 : i32, i32, i32
  }
  func.func @transform_3(%arg0: i32, %arg1: i32) -> (i32, i32, i32) {
    %c1_i32 = arith.constant 1 : i32
    %0 = arith.muli %arg0, %c1_i32 : i32
    %1 = arith.addi %0, %arg1 : i32
    %c0_i32 = arith.constant 0 : i32
    %c0_i32_0 = arith.constant 0 : i32
    %c0_i32_1 = arith.constant 0 : i32
    return %c0_i32, %1, %c0_i32_0 : i32, i32, i32
  }
  func.func @transform_4(%arg0: i32, %arg1: i32) -> (i32, i32, i32) {
    %c1_i32 = arith.constant 1 : i32
    %0 = arith.muli %arg0, %c1_i32 : i32
    %1 = arith.addi %0, %arg1 : i32
    %c0_i32 = arith.constant 0 : i32
    %c0_i32_0 = arith.constant 0 : i32
    %c0_i32_1 = arith.constant 0 : i32
    return %c0_i32, %1, %c0_i32_0 : i32, i32, i32
  }
  func.func @transform_5(%arg0: i32, %arg1: i32) -> (i32, i32, i32) {
    %c0_i32 = arith.constant 0 : i32
    %c0_i32_0 = arith.constant 0 : i32
    %c0_i32_1 = arith.constant 0 : i32
    return %arg0, %c0_i32, %c0_i32_0 : i32, i32, i32
  }
  func.func @transform_6(%arg0: i32, %arg1: i32) -> (i32, i32, i32) {
    %c0_i32 = arith.constant 0 : i32
    %c0_i32_0 = arith.constant 0 : i32
    %c0_i32_1 = arith.constant 0 : i32
    return %arg0, %c0_i32, %c0_i32_0 : i32, i32, i32
  }
}

</mosaic_0001>

<bundles_post_ra>
// kernel: tpu_custom_call.1
= control target key start
LH: loop header
LB: loop body
LE: loop exit
PB: predicated region body
PF: predicated region fallthrough
CT: control target
= control target key end

     0   :  { %s1910_s0 = inlined_call_operand.hbm [shape: f32[1,16,128], index: 0, kind: input, shape index: {}]   ;;  %s1911_s1 = inlined_call_operand.hbm [shape: f32[3,16,128], index: 1, kind: input, shape index: {}]   ;;  %s1912_s2 = inlined_call_operand.hbm [shape: f32[3,16,128], index: 2, kind: input, shape index: {}]   ;;  %s1913_s3 = inlined_call_operand.hbm [shape: f32[9,16,128], index: 3, kind: input, shape index: {}]   ;;  %s1914_s4 = inlined_call_operand.hbm [shape: f32[9,16,128], index: 4, kind: input, shape index: {}]   ;;  %s1915_s5 = inlined_call_operand.hbm [shape: f32[2,8,128], index: 5, kind: output, shape index: {0}]   ;;  %s1916_s6 = inlined_call_operand.hbm [shape: f32[2,8,128], index: 6, kind: output, shape index: {1}]  }
   0x1   :  { %1937 = sst [smem:[#allocation26_spill]] %s1910_s0 }
   0x2   :  { %1938 = sst [smem:[#allocation27_spill]] %s1911_s1 }
   0x3   :  { %1939 = sst [smem:[#allocation28_spill]] %s1913_s3 }
   0x4   :  { %1940 = sst [smem:[#allocation29_spill]] %s1915_s5 }
   0x5   :  { %1941 = sst [smem:[#allocation30_spill]] %s1916_s6 }
   0x6   :  { %12 = vsyncpa [#allocation3], 0 }
   0x7   :  { %14 = vsyncpa [#allocation3 + $0x1], 0 }
   0x8   :  { %15 = vsyncpa [#allocation6], 0 }
   0x9   :  { %17 = vsyncpa [#allocation6 + $0x1], 0 }
   0xa   :  { %18 = vsyncpa [#allocation9], 0 }
   0xb   :  { %20 = vsyncpa [#allocation9 + $0x1], 0 }
   0xc   :  { %21 = vsyncpa [#allocation4], 0 }
   0xd   :  { %23 = vsyncpa [#allocation4 + $0x1], 0 }
   0xe   :  { %24 = vsyncpa [#allocation13], 0 }
   0xf   :  { %26 = vsyncpa [#allocation13 + $0x1], 0  ;;  %s1357_s21 = smov 0   ;;  %s1359_s22 = smov 0  }
  0x10   :  { %s1361_s23 = smov 0   ;;  %s1363_s24 = smov 0  }
  0x11   :  { %s1365_s25 = smov 0   ;;  %s1367_s26 = smov 0  }
  0x12 LB: > { %1942 = sst [smem:[#allocation19_spill]] %s1290_s21  ;;  %s1388_s27 = sadd.s32 4294967295, %s1310_s26   ;;  %s1310_s26 = sphi %s1367_s26, %s32_s26   ;;  %s1306_s25 = sphi %s1365_s25, %s1979_s25   ;;  %s1302_s24 = sphi %s1363_s24, %s1978_s24   ;;  %s1298_s23 = sphi %s1361_s23, %s1977_s23   ;;  %s1294_s22 = sphi %s1359_s22, %s1981_s22   ;;  %s1290_s21 = sphi %s1357_s21, %s1980_s21  }
  0x13   : > { %1943 = sst [smem:[#allocation20_spill]] %s1298_s23  ;;  %s895_s28 = sadd.s32 4294967294, %s1310_s26  }
  0x14   : > { %1944 = sst [smem:[#allocation21_spill]] %s1306_s25  ;;  %s44_s29 = sadd.s32 1, %s1306_s25 }
  0x15   : > { %1945 = sst [smem:[#allocation22_spill]] %s1310_s26  ;;  %s53_s30 = sadd.s32 1, %s1298_s23 }
  0x16   : > { %p46_p0 = scmp.ge.s32.totalorder %s44_s29, 2  ;;  %p60_p1 = scmp.ne.s32.totalorder %s1298_s23, %s1294_s22 }
  0x17   : > { %p61_p2 = scmp.eq.s32.totalorder %s1310_s26, 0  ;;  %p66_p3 = scmp.ne.s32.totalorder %s1294_s22, %s1290_s21 }
  0x18   : > { %s1983_s29 = smov (%p46_p0, %s44_s29), 0  ;;  %p67_p5 = scmp.eq.s32.totalorder %s1388_s27, 0 }
  0x19   : > { %1946 = sst [smem:[#allocation23_spill]] %s1983_s29  ;;  %p1400_p4 = por %p61_p2, %p60_p1 }
  0x1a   : > { %s50_s8 = ssub.s32 %s1306_s25, %s1983_s29  ;;  %p202_p6 = scmp.eq.s32.totalorder %s1388_s27, 1 }
  0x1b   : > { %p51_p7 = scmp.eq.s32.totalorder %s50_s8, 0  ;;  %p1408_p8 = por %p67_p5, %p66_p3 }
  0x1c   : > { %p1412_p9 = por %p202_p6, %p60_p1  ;;  %p208_p10 = scmp.eq.s32.totalorder %s895_s28, 1 }
  0x1d   : > { %s1948_s9 = scalar_select %p1408_p8, 1, 0 }
  0x1e   : > { %s1949_s10 = scalar_select %p1412_p9, 1, 0 }
  0x1f   : > { %s1417_s11 = scalar_select %p51_p7, %s1298_s23, %s53_s30  }
  0x20   : > { %p1419_p11 = por %p208_p10, %p66_p3  ;;  %p978_p13 = scmp.lt.s32.totalorder %s1310_s26, 2 }
  0x21   : > { %1950 = sst [smem:[#allocation24_spill]] %s1417_s11  ;;  %s1426_s13 = sand.u32 1, %s1298_s23  }
  0x22   : > { %s1951_s12 = scalar_select %p1419_p11, 1, 0 }
  0x23   : > { %s1429_s14 = sshll.u32 %s1306_s25, 7  ;;  %s1920_s15 = sand.u32 1, %s1310_s26  }
  0x24   : > { %1952 = sst [smem:[#allocation25_spill]] %s1951_s12  ;;  %p1434_p0 = pnand %p978_p13, %p1400_p4 }
  0x25   : > { %s1917_s17 = smul.u32 24, %s1426_s13  ;;  %s1954_s1 = sld [smem:[#allocation27_spill]] }
  0x26   : > { %s1452_s7 = scalar_lea.sflag [#allocation6], %s1920_s15  ;;  %p1458_p3 = pneg %p1434_p0 }
  0x27   : > { %s277_s28 = scalar_lea.vmem [#allocation5], %s1917_s17 }
  0x28   : > { %s284_s30 = sshll.u32 %s277_s28, 4  ;;  %s1447_s30 = int_to_ptr.vmem [resolvable:$true] %s284_s30 }
  0x2b   : > { %s1443_s20 = scalar_lea.hbm %s1954_s1, %s1429_s14  ;;  %s1043_s28 = scalar_lea.hbm %s1954_s1, 768 }
  0x2c   : > { %s1038_s8 = scalar_lea.hbm %s1443_s20, 384  ;;  %p1044_p6 = scmp.lt.u32.totalorder %s1443_s20, %s1954_s1 }
  0x2d   : > { %p1039_p2 = scmp.ne.s32.totalorder %s1443_s20, %s1038_s8  ;;  %p1045_p7 = scmp.lt.u32.totalorder %s1043_s28, %s1038_s8 }
  0x2e   : > { %p1047_p13 = scmp.lt.u32.totalorder %s1038_s8, %s1443_s20 }
  0x2f   : > { %p1041_p4 = pnand %p1458_p3, %p1039_p2  ;;  %p1046_p10 = por %p1045_p7, %p1044_p6 }
  0x31   : > { %p1042_p5 = pneg %p1041_p4  ;;  %p1048_p12 = por %p1047_p13, %p1046_p10 }
  0x33   : > { %p1049_p1 = pnand %p1048_p12, %p1042_p5 }
  0x35   : > { %1052 = shalt.err (!%p1049_p1)
}
  0x36   : > { %s1053_s15 = scalar_lea.vmem %s1447_s30, 384  ;;  %s1312_s17 = smov [#allocation5]  }
  0x37   : > { %p1054_p2 = scmp.ne.s32.totalorder %s1447_s30, %s1053_s15  ;;  %s1058_s19 = sshll.u32 %s1312_s17, 4  ;;  %s1059_s19 = int_to_ptr.vmem [resolvable:$false] %s1058_s19 }
  0x38   : > { %s1060_s25 = scalar_lea.vmem %s1059_s19, 768  ;;  %p1061_p9 = scmp.lt.s32.totalorder %s1447_s30, %s1059_s19 }
  0x39   : > { %p1056_p4 = pnand %p1054_p2, %p1458_p3  ;;  %p1062_p8 = scmp.lt.s32.totalorder %s1060_s25, %s1053_s15 }
  0x3b   : > { %p1057_p11 = pneg %p1056_p4  ;;  %p1063_p6 = por %p1062_p8, %p1061_p9 }
  0x3d   : > { %p1064_p7 = pnand %p1063_p6, %p1057_p11 }
  0x3f   : > { %1067 = shalt.err (!%p1064_p7)
}
  0x40   : > { %s1924_s29 = smov 256   ;;  %s1926_s8 = smov 128  }
  0x41   : > { %s1928_s28 = smov 8   ;;  %p355_p8 = scmp.lt.s32.totalorder %s1310_s26, 3 }
  0x42   : > { %961 = dma.hbm_to_vmem [thread:$0]  (!%p1434_p0), %s1443_s20, 384, %s1447_s30, %s1452_s7, %s1924_s29, %s1926_s8, %s1928_s28  }
  0x43   : > { %s1932_s15 = smul.u32 72, %s1426_s13  ;;  %s1956_s3 = sld [smem:[#allocation28_spill]] }
  0x44   : > { %p1957_p9 = scmp.ge.s32.totalorder %s1310_s26, 1  ;;  %s898_s20 = sshll.u32 %s1426_s13, 3 }
  0x45   : > { %s319_s11 = scalar_lea.vmem [#allocation8], %s1932_s15  ;;  %s1959_s30 = sand.u32 1, %s1310_s26  }
  0x46   : > { %p1495_p11 = pnand %p1957_p9, %p355_p8  ;;  %s326_s23 = sshll.u32 %s319_s11, 4  ;;  %s1501_s23 = int_to_ptr.vmem [resolvable:$true] %s326_s23 }
  0x47   : > { %s1506_s29 = scalar_lea.sflag [#allocation9], %s1959_s30 }
  0x48   : > { %s1958_s1 = scalar_select %p1495_p11, 1, 0 }
  0x49   : > { %s1491_s25 = scalar_lea.hbm %s1956_s3, %s1429_s14  ;;  %s1073_s28 = scalar_lea.hbm %s1956_s3, 2304 }
  0x4a   : > { %s1068_s17 = scalar_lea.hbm %s1491_s25, 1152  ;;  %p1074_p10 = scmp.lt.u32.totalorder %s1491_s25, %s1956_s3 }
  0x4b   : > { %p1069_p12 = scmp.ne.s32.totalorder %s1491_s25, %s1068_s17  ;;  %p1075_p13 = scmp.lt.u32.totalorder %s1073_s28, %s1068_s17 }
  0x4c   : > { %p1077_p4 = scmp.lt.u32.totalorder %s1068_s17, %s1491_s25 }
  0x4d   : > { %p1071_p1 = pnand %p1069_p12, %p1458_p3  ;;  %p1076_p2 = por %p1075_p13, %p1074_p10 }
  0x4f   : > { %p1072_p5 = pneg %p1071_p1  ;;  %p1078_p6 = por %p1077_p4, %p1076_p2 }
  0x51   : > { %p1079_p7 = pnand %p1078_p6, %p1072_p5 }
  0x53   : > { %1082 = shalt.err (!%p1079_p7)
}
  0x54   : > { %s1083_s11 = scalar_lea.vmem %s1501_s23, 1152  ;;  %s1316_s8 = smov [#allocation8]  }
  0x55   : > { %p1084_p8 = scmp.ne.s32.totalorder %s1501_s23, %s1083_s11  ;;  %s1088_s30 = sshll.u32 %s1316_s8, 4  ;;  %s1089_s30 = int_to_ptr.vmem [resolvable:$false] %s1088_s30 }
  0x56   : > { %s1090_s21 = scalar_lea.vmem %s1089_s30, 2304  ;;  %p1091_p1 = scmp.lt.s32.totalorder %s1501_s23, %s1089_s30 }
  0x57   : > { %p1086_p9 = pnand %p1084_p8, %p1458_p3  ;;  %p1092_p11 = scmp.lt.s32.totalorder %s1090_s21, %s1083_s11 }
  0x59   : > { %p1087_p12 = pneg %p1086_p9  ;;  %p1093_p10 = por %p1092_p11, %p1091_p1 }
  0x5b   : > { %p1094_p13 = pnand %p1093_p10, %p1087_p12 }
  0x5d   : > { %1097 = shalt.err (!%p1094_p13)
}
  0x5e   : > { %s1960_s12 = smov 8   ;;  %s1961_s28 = smov 128  }
  0x5f   : > { %s1962_s17 = smov 256   ;;  %s1963_s0 = sld [smem:[#allocation26_spill]] }
  0x60   : > { %967 = dma.hbm_to_vmem [thread:$0]  (!%p1434_p0), %s1491_s25, 1152, %s1501_s23, %s1506_s29, %s1962_s17, %s1961_s28, %s1960_s12  }
  0x61   : > { %s258_s30 = scalar_lea.vmem [#allocation2], %s898_s20  ;;  %s1547_s26 = scalar_lea.hbm %s1912_s2, %s1429_s14 }
  0x62   : > { %s266_s21 = sshll.u32 %s258_s30, 4  ;;  %s255_s23 = scalar_lea.sflag [#allocation3], %s1426_s13  ;;  %s1541_s21 = int_to_ptr.vmem [resolvable:$true] %s266_s21 }
  0x65   : > { %s1537_s11 = scalar_lea.hbm %s1963_s0, %s1429_s14  ;;  %s1103_s6 = scalar_lea.hbm %s1963_s0, 256 }
  0x66   : > { %s1098_s25 = scalar_lea.hbm %s1537_s11, 128  ;;  %p1104_p4 = scmp.lt.u32.totalorder %s1537_s11, %s1963_s0 }
  0x67   : > { %p1099_p11 = scmp.ne.s32.totalorder %s1537_s11, %s1098_s25  ;;  %p1105_p6 = scmp.lt.u32.totalorder %s1103_s6, %s1098_s25 }
  0x68   : > { %p1107_p8 = scmp.lt.u32.totalorder %s1098_s25, %s1537_s11 }
  0x69   : > { %p1101_p5 = pnand %p1099_p11, %p1458_p3  ;;  %p1106_p7 = por %p1105_p6, %p1104_p4 }
  0x6b   : > { %p1102_p2 = pneg %p1101_p5  ;;  %p1108_p9 = por %p1107_p8, %p1106_p7 }
  0x6d   : > { %p1109_p12 = pnand %p1108_p9, %p1102_p2 }
  0x6f   : > { %1112 = shalt.err (!%p1109_p12)
}
  0x70   : > { %s1113_s3 = scalar_lea.vmem %s1541_s21, 128  ;;  %s1317_s15 = smov [#allocation2]  }
  0x71   : > { %p1114_p1 = scmp.ne.s32.totalorder %s1541_s21, %s1113_s3  ;;  %s1118_s30 = sshll.u32 %s1317_s15, 4  ;;  %s1119_s30 = int_to_ptr.vmem [resolvable:$false] %s1118_s30 }
  0x72   : > { %s1120_s5 = scalar_lea.vmem %s1119_s30, 256  ;;  %p1121_p11 = scmp.lt.s32.totalorder %s1541_s21, %s1119_s30 }
  0x73   : > { %p1116_p10 = pnand %p1114_p1, %p1458_p3  ;;  %p1122_p5 = scmp.lt.s32.totalorder %s1120_s5, %s1113_s3 }
  0x75   : > { %p1117_p13 = pneg %p1116_p10  ;;  %p1123_p4 = por %p1122_p5, %p1121_p11 }
  0x77   : > { %p1124_p6 = pnand %p1123_p4, %p1117_p13 }
  0x79   : > { %1127 = shalt.err (!%p1124_p6)
}
  0x7a   : > { %958 = dma.hbm_to_vmem [thread:$0]  (!%p1434_p0), %s1537_s11, 128, %s1541_s21, %s255_s23  }
  0x7b   : > { %s1964_s6 = smul.u32 24, %s1426_s13  ;;  %s1579_s3 = scalar_lea.hbm %s1914_s4, %s1429_s14 }
  0x7c   : > { %s1128_s15 = scalar_lea.hbm %s1547_s26, 384  ;;  %s1133_s0 = scalar_lea.hbm %s1912_s2, 768 }
  0x7d   : > { %s298_s25 = scalar_lea.vmem [#allocation7], %s1964_s6  ;;  %p1129_p2 = scmp.ne.s32.totalorder %s1547_s26, %s1128_s15 }
  0x7e   : > { %s305_s19 = sshll.u32 %s298_s25, 4  ;;  %p1134_p9 = scmp.lt.u32.totalorder %s1547_s26, %s1912_s2  ;;  %s1573_s19 = int_to_ptr.vmem [resolvable:$true] %s305_s19 }
  0x7f   : > { %p1131_p7 = pnand %p1129_p2, %p1458_p3  ;;  %p1135_p12 = scmp.lt.u32.totalorder %s1133_s0, %s1128_s15 }
  0x80   : > { %p1137_p10 = scmp.lt.u32.totalorder %s1128_s15, %s1547_s26 }
  0x81   : > { %p1132_p8 = pneg %p1131_p7  ;;  %p1136_p1 = por %p1135_p12, %p1134_p9 }
  0x83   : > { %p1138_p13 = por %p1137_p10, %p1136_p1 }
  0x85   : > { %p1139_p11 = pnand %p1138_p13, %p1132_p8 }
  0x87   : > { %1142 = shalt.err (!%p1139_p11)
}
  0x88   : > { %s1143_s14 = scalar_lea.vmem %s1573_s19, 384  ;;  %s1318_s23 = smov [#allocation7]  }
  0x89   : > { %p1144_p5 = scmp.ne.s32.totalorder %s1573_s19, %s1143_s14  ;;  %s1148_s6 = sshll.u32 %s1318_s23, 4  ;;  %s1149_s6 = int_to_ptr.vmem [resolvable:$false] %s1148_s6 }
  0x8a   : > { %s1150_s25 = scalar_lea.vmem %s1149_s6, 768  ;;  %p1151_p2 = scmp.lt.s32.totalorder %s1573_s19, %s1149_s6 }
  0x8b   : > { %p1146_p4 = pnand %p1144_p5, %p1458_p3  ;;  %p1152_p7 = scmp.lt.s32.totalorder %s1150_s25, %s1143_s14 }
  0x8d   : > { %p1147_p6 = pneg %p1146_p4  ;;  %p1153_p9 = por %p1152_p7, %p1151_p2 }
  0x8f   : > { %p1154_p12 = pnand %p1153_p9, %p1147_p6 }
  0x91   : > { %1157 = shalt.err (!%p1154_p12)
}
  0x92   : > { %964 = dma.hbm_to_vmem [thread:$0]  (!%p1434_p0), %s1547_s26, 384, %s1573_s19, %s1452_s7, %s1962_s17, %s1961_s28, %s1960_s12  }
  0x93   : > { %s1965_s0 = smul.u32 72, %s1426_s13  ;;  %s1158_s15 = scalar_lea.hbm %s1579_s3, 1152 }
  0x94   : > { %p1159_p8 = scmp.ne.s32.totalorder %s1579_s3, %s1158_s15  ;;  %s1163_s11 = scalar_lea.hbm %s1914_s4, 2304 }
  0x95   : > { %s340_s8 = scalar_lea.vmem [#allocation10], %s1965_s0  ;;  %p1164_p13 = scmp.lt.u32.totalorder %s1579_s3, %s1914_s4 }
  0x96   : > { %s347_s20 = sshll.u32 %s340_s8, 4  ;;  %p1161_p1 = pnand %p1159_p8, %p1458_p3  ;;  %s1608_s20 = int_to_ptr.vmem [resolvable:$true] %s347_s20 }
  0x97   : > { %p1165_p11 = scmp.lt.u32.totalorder %s1163_s11, %s1158_s15  ;;  %p1167_p4 = scmp.lt.u32.totalorder %s1158_s15, %s1579_s3 }
  0x98   : > { %p1162_p10 = pneg %p1161_p1 }
  0x99   : > { %p1166_p5 = por %p1165_p11, %p1164_p13 }
  0x9b   : > { %p1168_p6 = por %p1167_p4, %p1166_p5 }
  0x9d   : > { %p1169_p2 = pnand %p1168_p6, %p1162_p10 }
  0x9f   : > { %1172 = shalt.err (!%p1169_p2)
}
  0xa0   : > { %s1173_s26 = scalar_lea.vmem %s1608_s20, 1152  ;;  %s1319_s13 = smov [#allocation10]  }
  0xa1   : > { %p1174_p7 = scmp.ne.s32.totalorder %s1608_s20, %s1173_s26  ;;  %s1178_s7 = sshll.u32 %s1319_s13, 4  ;;  %s1179_s7 = int_to_ptr.vmem [resolvable:$false] %s1178_s7 }
  0xa2   : > { %s1180_s19 = scalar_lea.vmem %s1179_s7, 2304  ;;  %p1181_p8 = scmp.lt.s32.totalorder %s1608_s20, %s1179_s7 }
  0xa3   : > { %p1176_p9 = pnand %p1174_p7, %p1458_p3  ;;  %p1182_p1 = scmp.lt.s32.totalorder %s1180_s19, %s1173_s26 }
  0xa5   : > { %p1177_p12 = pneg %p1176_p9  ;;  %p1183_p13 = por %p1182_p1, %p1181_p8 }
  0xa7   : > { %p1184_p11 = pnand %p1183_p13, %p1177_p12 }
  0xa9   : > { %1187 = shalt.err (!%p1184_p11)
}
  0xaa   : > { %970 = dma.hbm_to_vmem [thread:$0]  (!%p1434_p0), %s1579_s3, 1152, %s1608_s20, %s1506_s29, %s1962_s17, %s1961_s28, %s1960_s12  }
  0xab   : > { %p1966_p3 = scmp.ne.s32.totalorder %s1958_s1, 0 }
  0xac   : > { %s1638_s18 = sand.u32 (!%p1966_p3), 1, %s1294_s22   ;;  %p1967_p10 = scmp.ne.s32.totalorder (!%p1966_p3), %s1948_s9, 0 }
  0xad   : > { %359 = sbr.rel (%p1966_p3) target bundleno = 272 (0x110), region = 40  ;;  %s1641_s23 = sshll.u32 (!%p1966_p3), %s1638_s18, 3 }
  0xae   : > { %s362_s16 = scalar_lea.sflag (!%p1966_p3), [#allocation3], %s1638_s18  ;;  %s365_s6 = scalar_lea.vmem (!%p1966_p3), [#allocation2], %s1641_s23 }
  0xb4   : > { %1269 = dma.done.wait (%p1967_p10), %s362_s16, 128  }
  0xb5   : > { %1271 = vsyncadd (%p1967_p10), %s362_s16, 4294967168  ;;  %s370_s1 = sand.u32 1, %s1388_s27   ;;  %s939_s29 = smul.u32 24, %s1638_s18 }
  0xb6   : > { %s371_s12 = scalar_lea.sflag [#allocation6], %s370_s1 }
  0xb7   : > { %s374_s28 = scalar_lea.vmem [#allocation5], %s939_s29 }
  0xb8   : > { %1273 = dma.done.wait (%p1967_p10), %s371_s12, 768  }
  0xb9   : > { %1275 = vsyncadd (%p1967_p10), %s371_s12, 4294966528  ;;  %s940_s17 = smul.u32 72, %s1638_s18  ;;  %s383_s3 = scalar_lea.vmem [#allocation7], %s939_s29 }
  0xba   : > { %s389_s25 = scalar_lea.sflag [#allocation9], %s370_s1 }
  0xbb   : > { %s1656_s0 = scalar_lea.vmem [#allocation8], %s940_s17 }
  0xbc   : > { %1277 = dma.done.wait (%p1967_p10), %s389_s25, 2304  }
  0xbd   : > { %1279 = vsyncadd (%p1967_p10), %s389_s25, 4294964992  ;;  %v468_v0 = vld [vmem:[%s374_s28] sm:$0xff]  ;;  %v469_v1 = vld [vmem:[%s383_s3] sm:$0xff]  ;;  %s401_s27 = scalar_lea.vmem [#allocation10], %s940_s17  ;;  %s931_s9 = sshll.u32 %s1302_s24, 7 }
  0xbe   : > { %v1662_v2 = vsub.f32 %v468_v0, %v469_v1  ;;  %v908_v3 = vld [vmem:[%s374_s28 + $0x8] sm:$0xff]  ;;  %v909_v4 = vld [vmem:[%s383_s3 + $0x8] sm:$0xff]  ;;  %v910_v5 = vld [vmem:[%s374_s28 + $0x10] sm:$0xff]  ;;  %s447_s8 = scalar_lea.vmem [#allocation11], %s1641_s23  ;;  %s1968_s5 = sld [smem:[#allocation29_spill]] }
  0xbf   : > { %v1664_v6 = vsub.f32 %v908_v3, %v909_v4  ;;  %v911_v7 = vld [vmem:[%s383_s3 + $0x10] sm:$0xff]  ;;  %v1670_v10 = vld [vmem:[%s401_s27 + $0x18] sm:$0xff]  ;;  %v1676_v13 = vld [vmem:[%s401_s27 + $0x28] sm:$0xff]  ;;  %s660_s20 = sshll.u32 %s447_s8, 4  ;;  %s642_s21 = scalar_lea.sflag [#allocation4], %s1638_s18  ;;  %s1772_s20 = int_to_ptr.vmem [resolvable:$true] %s660_s20 }
  0xc0   : > { %v1666_v8 = vsub.f32 %v910_v5, %v911_v7  ;;  %v484_v9 = vmul.f32 %v1662_v2, %v1662_v2  ;;  %v1672_v11 = vld [vmem:[%s401_s27 + $0x20] sm:$0xff]  ;;  %v1678_v14 = vld [vmem:[%s401_s27 + $0x30] sm:$0xff]  ;;  %v1680_v15 = vld [vmem:[%s401_s27 + $0x38] sm:$0xff]  ;;  %s1188_s14 = scalar_lea.vmem %s1772_s20, 128  ;;  %p1969_p5 = scmp.ne.s32.totalorder %s1949_s10, 0 }
  0xc1   : > { %v485_v12 = vmul.f32 %v1664_v6, %v1664_v6  ;;  %v1684_v17 = vld [vmem:[%s401_s27] sm:$0xff]  ;;  %v1686_v18 = vld [vmem:[%s401_s27 + $0x8] sm:$0xff]  ;;  %v533_v20 = vmul.f32 %v1680_v15, %v1676_v13  ;;  %v1694_v21 = vmul.f32 %v1678_v14, %v1676_v13  ;;  %v538_v22 = vmul.f32 %v1680_v15, %v1670_v10  ;;  %v1698_v24 = vld [vmem:[%s401_s27 + $0x10] sm:$0xff]  ;;  %p1189_p0 = scmp.ne.s32.totalorder %s1772_s20, %s1188_s14  ;;  %s1320_s26 = smov [#allocation11]  }
  0xc2   : > { %v487_v16 = vmul.f32 %v1666_v8, %v1666_v8  ;;  %v1688_v19 = vld [vmem:[%s401_s27 + $0x40] sm:$0xff]  ;;  %v1701_v25 = vld [vmem:[%s1656_s0 + $0x18] sm:$0xff]  ;;  %v1704_v26 = vld [vmem:[%s1656_s0 + $0x20] sm:$0xff]  ;;  %v539_v29 = vmul.f32 %v1678_v14, %v1672_v11  ;;  %s1192_s13 = sshll.u32 %s1320_s26, 4  ;;  %s1193_s13 = int_to_ptr.vmem [resolvable:$false] %s1192_s13 }
  0xc3   : > { %v486_v23 = vadd.f32 %v485_v12, %v484_v9  ;;  %v532_v27 = vmul.f32 %v1688_v19, %v1672_v11  ;;  %v1710_v28 = vmul.f32 %v1688_v19, %v1670_v10  ;;  %v1715_v30 = vld [vmem:[%s1656_s0 + $0x28] sm:$0xff]  ;;  %v1718_v31 = vld [vmem:[%s1656_s0 + $0x30] sm:$0xff]  ;;  %v1721_v32 = vld [vmem:[%s1656_s0 + $0x38] sm:$0xff]  ;;  %p1190_p4 = pnand %p1189_p0, %p1969_p5  ;;  %s1194_s7 = scalar_lea.vmem %s1193_s13, 256 }
  0xc4   : > { %v1724_v34 = vld [vmem:[%s1656_s0 + $0x40] sm:$0xff]  ;;  %v1730_v37 = vsub.f32 %v538_v22, %v539_v29  ;;  %v1734_v38 = vld [vmem:[%s365_s6] sm:$0xff]  ;;  %v547_v40 = vmul.f32 %v1721_v32, %v1715_v30  ;;  %v551_v42 = vmul.f32 %v1718_v31, %v1715_v30  ;;  %v1751_v45 = vld [vmem:[%s1656_s0 + $0x8] sm:$0xff]  ;;  %v555_v51 = vmul.f32 %v1721_v32, %v1701_v25  ;;  %s1770_s11 = scalar_lea.hbm %s1968_s5, %s931_s9  ;;  %p1195_p2 = scmp.lt.s32.totalorder %s1772_s20, %s1193_s13 }
  0xc5   : > { %v488_v33 = vadd.f32 %v487_v16, %v486_v23  ;;  %v1726_v35 = vsub.f32 %v532_v27, %v533_v20  ;;  %v537_v36 = vsub.f32 %v1710_v28, %v1694_v21  ;;  %v546_v39 = vmul.f32 %v1724_v34, %v1704_v26  ;;  %v1748_v44 = vld [vmem:[%s1656_s0] sm:$0xff]  ;;  %v1763_v53 = vld [vmem:[%s1656_s0 + $0x10] sm:$0xff]  ;;  %p1191_p6 = pneg %p1190_p4  ;;  %p1196_p7 = scmp.lt.s32.totalorder %s1194_s7, %s1188_s14 }
  0xc6   : > { %v550_v41 = vmul.f32 %v1724_v34, %v1701_v25  ;;  %v544_v48 = vmul.f32 %v1698_v24, %v1730_v37  ;;  %v556_v52 = vmul.f32 %v1718_v31, %v1704_v26  ;;  %vm467_vm0 = vcmp.gt.f32.partialorder %v1734_v38, 0.5 }
  0xc7   : > { %v489_v43 = vmul.f32 %v488_v33, %v1734_v38  ;;  %v541_v46 = vmul.f32 %v1726_v35, %v1684_v17  ;;  %v542_v47 = vmul.f32 %v1686_v18, %v537_v36  ;;  %v548_v49 = vsub.f32 %v546_v39, %v547_v40  ;;  %p1197_p9 = por %p1196_p7, %p1195_p2 }
  0xc8   : > { %v552_v50 = vsub.f32 %v550_v41, %v551_v42  ;;  %v557_v57 = vsub.f32 %v555_v51, %v556_v52 }
  0xc9   : > { %v543_v54 = vsub.f32 %v541_v46, %v542_v47  ;;  %v549_v55 = vmul.f32 %v548_v49, %v1748_v44  ;;  %491 = vst [vmem:[%s447_s8] sm:$0xff] %v489_v43  ;;  %p1198_p12 = pnand %p1197_p9, %p1191_p6 }
  0xca   : > { %v553_v56 = vmul.f32 %v1751_v45, %v552_v50  ;;  %v558_v60 = vmul.f32 %v1763_v53, %v557_v57 }
  0xcb   : > { %v545_v58 = vadd.f32 %v544_v48, %v543_v54 }
  0xcc   : > { %v554_v59 = vsub.f32 %v549_v55, %v553_v56 }
  0xcd   : > { %1201 = shalt.err (!%p1198_p12)
}
  0xce   : > { %s1202_s19 = scalar_lea.hbm %s1770_s11, 128  ;;  %s1206_s1 = scalar_lea.hbm %s1968_s5, 256 }
  0xcf   : > { %p1203_p8 = scmp.ne.s32.totalorder %s1770_s11, %s1202_s19  ;;  %p1207_p11 = scmp.lt.u32.totalorder %s1770_s11, %s1968_s5 }
  0xd0   : > { %p1208_p3 = scmp.lt.u32.totalorder %s1206_s1, %s1202_s19  ;;  %p1210_p0 = scmp.lt.u32.totalorder %s1202_s19, %s1770_s11 }
  0xd1   : > { %p1204_p1 = pnand %p1203_p8, %p1969_p5 }
  0xd2   : > { %p1209_p10 = por %p1208_p3, %p1207_p11 }
  0xd3   : > { %p1205_p13 = pneg %p1204_p1 }
  0xd4   : > { %p1211_p4 = por %p1210_p0, %p1209_p10 }
  0xd6   : > { %p1212_p6 = pnand %p1211_p4, %p1205_p13 }
  0xd8   : > { %1215 = shalt.err (!%p1212_p6)
}
  0xd9   : > { %951 = dma.vmem_to_hbm [thread:$0]  (%p1969_p5), %s1772_s20, 128, %s1770_s11, %s642_s21   ;;  %v560_v61 = vsel %vm467_vm0, %v545_v58, 1.0  ;;  %v559_v62 = vadd.f32 %v558_v60, %v554_v59  ;;  %v570_v63 = vmul.f32 %v1672_v11, %v1698_v24  ;;  %v565_v1 = vmul.f32 %v1680_v15, %v1698_v24 }
  0xda   : > { %1032 = vrcp.f32 %v560_v61  ;;  %v566_v3 = vmul.f32 %v1688_v19, %v1686_v18  ;;  %v569_v4 = vmul.f32 %v1676_v13, %v1686_v18  ;;  %v586_v5 = vmul.f32 %v1688_v19, %v1684_v17  ;;  %s454_s28 = scalar_lea.vmem [#allocation12], %s1641_s23  ;;  %s1970_s0 = sld [smem:[#allocation30_spill]] }
  0xdb   : > { %v561_v0 = vsel %vm467_vm0, %v559_v62, 1.0  ;;  %v587_v7 = vmul.f32 %v1678_v14, %v1698_v24  ;;  %v590_v9 = vmul.f32 %v1670_v10, %v1698_v24  ;;  %v591_v12 = vmul.f32 %v1676_v13, %v1684_v17  ;;  %s673_s17 = sshll.u32 %s454_s28, 4  ;;  %s647_s8 = scalar_lea.sflag [#allocation13], %s1638_s18  ;;  %s1863_s17 = int_to_ptr.vmem [resolvable:$true] %s673_s17 }
  0xdc   : > { %v608_v16 = vmul.f32 %v1678_v14, %v1686_v18  ;;  %v609_v20 = vmul.f32 %v1680_v15, %v1684_v17  ;;  %1034 = vrcp.f32 %v561_v0  ;;  %v567_v22 = vsub.f32 %v565_v1, %v566_v3  ;;  %s1216_s20 = scalar_lea.vmem %s1863_s17, 128  ;;  %s1321_s23 = smov [#allocation12]  }
  0xdd   : > { %v571_v23 = vsub.f32 %v569_v4, %v570_v63  ;;  %v584_v19 = vsub.f32 %v1694_v21, %v1710_v28  ;;  %v588_v27 = vsub.f32 %v586_v5, %v587_v7  ;;  %v592_v29 = vsub.f32 %v590_v9, %v591_v12  ;;  %p1217_p2 = scmp.ne.s32.totalorder %s1863_s17, %s1216_s20  ;;  %s1220_s15 = sshll.u32 %s1321_s23, 4  ;;  %s1221_s15 = int_to_ptr.vmem [resolvable:$false] %s1220_s15 }
  0xde   : > { %v612_v24 = vmul.f32 %v1672_v11, %v1684_v17  ;;  %v613_v13 = vmul.f32 %v1670_v10, %v1686_v18  ;;  %v610_v36 = vsub.f32 %v608_v16, %v609_v20  ;;  %s1222_s24 = scalar_lea.vmem %s1221_s15, 256  ;;  %p1223_p12 = scmp.lt.s32.totalorder %s1863_s17, %s1221_s15 }
  0xdf   : > { %p1218_p7 = pnand %p1217_p2, %p1969_p5  ;;  %p1224_p8 = scmp.lt.s32.totalorder %s1222_s24, %s1216_s20 }
  0xe0   : > { %v614_v21 = vsub.f32 %v612_v24, %v613_v13  ;;  %s1861_s27 = scalar_lea.hbm %s1970_s0, %s931_s9 }
  0xe1   : > { %p1219_p9 = pneg %p1218_p7  ;;  %p1225_p1 = por %p1224_p8, %p1223_p12 }
  0xe3   : > { %p1226_p13 = pnand %p1225_p1, %p1219_p9 }
  0xe4   : > { %v1033_v33 = vpop.eup %1032 }
  0xe5   : > { %v564_v14 = vmul.f32 %v1033_v33, %v1726_v35  ;;  %v568_v39 = vmul.f32 %v1033_v33, %v567_v22  ;;  %v572_v15 = vmul.f32 %v1033_v33, %v571_v23  ;;  %v585_v40 = vmul.f32 %v1033_v33, %v584_v19 }
  0xe6   : > { %v589_v41 = vmul.f32 %v1033_v33, %v588_v27  ;;  %v593_v42 = vmul.f32 %v1033_v33, %v592_v29  ;;  %v607_v43 = vmul.f32 %v1033_v33, %v1730_v37  ;;  %v611_v35 = vmul.f32 %v1033_v33, %v610_v36  ;;  %v1035_v50 = vpop.eup %1034 }
  0xe7   : > { %v573_v28 = vmul.f32 %v564_v14, %v1748_v44  ;;  %v574_v46 = vmul.f32 %v1701_v25, %v568_v39  ;;  %v576_v11 = vmul.f32 %v1718_v31, %v572_v15  ;;  %v578_v10 = vmul.f32 %v564_v14, %v1662_v2 }
  0xe8   : > { %v579_v17 = vmul.f32 %v568_v39, %v1664_v6  ;;  %v581_v18 = vmul.f32 %v572_v15, %v1666_v8  ;;  %v594_v48 = vmul.f32 %v1751_v45, %v585_v40  ;;  %v600_v49 = vmul.f32 %v585_v40, %v1662_v2 }
  0xe9   : > { %v575_v47 = vadd.f32 %v574_v46, %v573_v28  ;;  %v601_v37 = vmul.f32 %v589_v41, %v1664_v6  ;;  %v603_v25 = vmul.f32 %v593_v42, %v1666_v8  ;;  %v615_v51 = vmul.f32 %v1033_v33, %v614_v21 }
  0xea   : > { %v580_v44 = vadd.f32 %v579_v17, %v578_v10  ;;  %v596_v52 = vmul.f32 %v1704_v26, %v589_v41  ;;  %v622_v55 = vmul.f32 %v607_v43, %v1662_v2  ;;  %v623_v57 = vmul.f32 %v611_v35, %v1664_v6 }
  0xeb   : > { %v577_v31 = vadd.f32 %v576_v11, %v575_v47  ;;  %v602_v54 = vadd.f32 %v601_v37, %v600_v49  ;;  %v625_v45 = vmul.f32 %v615_v51, %v1666_v8  ;;  %v598_v59 = vmul.f32 %v1721_v32, %v593_v42 }
  0xec   : > { %v582_v56 = vadd.f32 %v581_v18, %v580_v44  ;;  %v632_v62 = vmul.f32 %v1035_v50, %v560_v61  ;;  %v624_v0 = vadd.f32 %v623_v57, %v622_v55  ;;  %v616_v26 = vmul.f32 %v1763_v53, %v607_v43 }
  0xed   : > { %v595_v58 = vadd.f32 %v594_v48, %v577_v31  ;;  %v604_v60 = vadd.f32 %v603_v25, %v602_v54  ;;  %v618_v9 = vmul.f32 %v1715_v30, %v611_v35  ;;  %v620_v61 = vmul.f32 %v1724_v34, %v615_v51 }
  0xee   : > { %v583_v63 = vmul.f32 %v582_v56, %v1662_v2  ;;  %1036 = vlog2.f32 %v632_v62  ;;  %v626_v4 = vadd.f32 %v625_v45, %v624_v0 }
  0xef   : > { %v597_v1 = vadd.f32 %v596_v52, %v595_v58  ;;  %v605_v3 = vmul.f32 %v604_v60, %v1664_v6 }
  0xf0   : > { %v627_v32 = vmul.f32 %v626_v4, %v1666_v8 }
  0xf1   : > { %v599_v5 = vadd.f32 %v598_v59, %v597_v1  ;;  %v606_v7 = vadd.f32 %v605_v3, %v583_v63 }
  0xf3   : > { %v617_v12 = vadd.f32 %v616_v26, %v599_v5  ;;  %v628_v16 = vadd.f32 %v627_v32, %v606_v7 }
  0xf5   : > { %v619_v2 = vadd.f32 %v618_v9, %v617_v12 }
  0xf7   : > { %v621_v20 = vadd.f32 %v620_v61, %v619_v2 }
  0xf8   : > { %v1037_v6 = vpop.eup %1036 }
  0xf9   : > { %v629_v53 = vadd.f32 %v628_v16, %v621_v20  ;;  %v634_v22 = vmul.f32 0.6931472, %v1037_v6 }
  0xfb   : > { %v928_v23 = vadd.f32 -3.0, %v629_v53 }
  0xfd   : > { %v635_v19 = vadd.f32 %v928_v23, %v634_v22 }
  0xff   : > { %v636_v27 = vmul.f32 0.5, %v635_v19 }
 0x101   : > { %v638_v30 = vsel %vm467_vm0, %v636_v27, 0.0 }
 0x102   : > { %640 = vst [vmem:[%s454_s28] sm:$0xff] %v638_v30 }
 0x103   : > { %1229 = shalt.err (!%p1226_p13)
}
 0x104   : > { %s1230_s18 = scalar_lea.hbm %s1861_s27, 128  ;;  %s1234_s11 = scalar_lea.hbm %s1970_s0, 256 }
 0x105   : > { %p1231_p11 = scmp.ne.s32.totalorder %s1861_s27, %s1230_s18  ;;  %p1235_p0 = scmp.lt.u32.totalorder %s1861_s27, %s1970_s0 }
 0x106   : > { %p1236_p4 = scmp.lt.u32.totalorder %s1234_s11, %s1230_s18  ;;  %p1238_p2 = scmp.lt.u32.totalorder %s1230_s18, %s1861_s27 }
 0x107   : > { %p1232_p3 = pnand %p1231_p11, %p1969_p5 }
 0x108   : > { %p1237_p6 = por %p1236_p4, %p1235_p0 }
 0x109   : > { %p1233_p10 = pneg %p1232_p3 }
 0x10a   : > { %p1239_p7 = por %p1238_p2, %p1237_p6 }
 0x10c   : > { %p1240_p9 = pnand %p1239_p7, %p1233_p10 }
 0x10e   : > { %1243 = shalt.err (!%p1240_p9)
}
 0x10f   : > { %952 = dma.vmem_to_hbm [thread:$0]  (%p1969_p5), %s1863_s17, 128, %s1861_s27, %s647_s8  }
 0x110 PF: > { %s1971_s26 = sld [smem:[#allocation19_spill]]  ;;  %s1972_s13 = sld [smem:[#allocation25_spill]] }
 0x111   : > { %s1973_s7 = sld [smem:[#allocation22_spill]] }
 0x116   : > { %s685_s19 = sand.u32 1, %s1971_s26   ;;  %p1974_p12 = scmp.ne.s32.totalorder %s1972_s13, 0 }
 0x117   : > { %p1975_p8 = scmp.ge.s32.totalorder %s1973_s7, 2  ;;  %s686_s16 = scalar_lea.sflag [#allocation4], %s685_s19 }
 0x119   : > { %p972_p1 = pnand %p1975_p8, %p1974_p12 }
 0x11b   : > { %1281 = dma.done.wait (!%p972_p1), %s686_s16, 128  }
 0x11c   : > { %1283 = vsyncadd (!%p972_p1), %s686_s16, 4294967168  ;;  %s695_s6 = scalar_lea.sflag [#allocation13], %s685_s19 }
 0x11d   : > { %1285 = dma.done.wait (!%p972_p1), %s695_s6, 128  }
 0x11e   : > { %1287 = vsyncadd (!%p972_p1), %s695_s6, 4294967168  ;;  %s32_s26 = sadd.s32 1, %s1973_s7   ;;  %s1976_s10 = sld [smem:[#allocation20_spill]] }
 0x11f   : > { %p29_p13 = scmp.ge.s32.totalorder %s32_s26, 4   ;;  %s1977_s23 = sld [smem:[#allocation24_spill]] }
 0x120   : > { %s1978_s24 = sld [smem:[#allocation21_spill]]  ;;  %s1979_s25 = sld [smem:[#allocation23_spill]] }
 0x121   : > { %s1980_s21 = smov %s1294_s22  ;;  %31 = sbr.rel (!%p29_p13) target bundleno = 18 (0x12), region = 174 }
 0x124   : > { %s1981_s22 = smov %s1976_s10 }
 0x128   :  { %700 = vsyncpa [#allocation3], 1 }
 0x129   :  { %702 = vsyncpa [#allocation3 + $0x1], 1 }
 0x12a   :  { %703 = vsyncpa [#allocation6], 1 }
 0x12b   :  { %705 = vsyncpa [#allocation6 + $0x1], 1 }
 0x12c   :  { %706 = vsyncpa [#allocation9], 1 }
 0x12d   :  { %708 = vsyncpa [#allocation9 + $0x1], 1 }
 0x12e   :  { %709 = vsyncpa [#allocation4], 1 }
 0x12f   :  { %711 = vsyncpa [#allocation4 + $0x1], 1 }
 0x130   :  { %712 = vsyncpa [#allocation13], 1 }
 0x131   :  { %714 = vsyncpa [#allocation13 + $0x1], 1 }

</bundles_post_ra>
